<compile_context>
chip_gen: v7x
topology: tpu7x:2x2x1
jax: 0.10.0
libtpu: 0.0.40
codegen_flags: <defaults>
</compile_context>

<pallas_src>
import functools

import jax
import jax.numpy as jnp
from jax import lax
from jax.experimental import pallas as pl
from jax.experimental.pallas import tpu as pltpu


_ROW_TILE_CAP = 256            # distance-matrix row tile (multiple of 8)
_COL_TILE_CAP = 512            # distance-matrix col tile (multiple of 8 / 128 / 256)
_STEP_VMEM_BUDGET = 24 * 2 ** 20   # per-grid-step VMEM budget used for tile sizing


def _round_up(v, m):
    return (v + m - 1) // m * m


def _pick_point_tile(n, cap):
    """Tile size along a point axis: multiple of 8, capped at `cap`."""
    n8 = _round_up(max(int(n), 1), 8)
    return n8 if n8 <= cap else cap


def _largest_divisor_leq(n, cap):
    for d in range(min(n, cap), 0, -1):
        if n % d == 0:
            return d
    return 1


def _rbf_mix(dist, betas):
    """mean_k exp(-beta_k * dist) with a static beta ladder.

    When the betas are (near-)integer multiples of the smallest one (true for
    geometric sigma ladders like (0.5, 1, 2)), a single EUP exp is computed and
    the remaining bandwidths are derived with VPU multiplies (integer powers),
    keeping the single EUP slot from becoming the saturating unit for K >= 3.
    """
    betas = tuple(float(b) for b in betas)
    inv_k = 1.0 / float(len(betas))
    bmin = min(betas)
    ratios = [b / bmin for b in betas]
    int_ratios = [int(round(r)) for r in ratios]
    use_powers = all(
        abs(r - ir) <= 1e-6 * max(1.0, abs(r)) and 1 <= ir <= 64
        for r, ir in zip(ratios, int_ratios))

    if use_powers:
        e0 = jnp.exp(-bmin * dist)
        cache = {1: e0}

        def power(p):
            if p not in cache:
                half = power(p // 2)
                v = half * half
                if p % 2:
                    v = v * e0
                cache[p] = v
            return cache[p]

        acc = None
        for ir in int_ratios:
            t = power(ir)
            acc = t if acc is None else acc + t
    else:
        acc = None
        for beta in betas:
            t = jnp.exp(-beta * dist)
            acc = t if acc is None else acc + t
    return acc * inv_k


def _rbf_sum_kernel(a_ref, b_ref, out_ref, acc_ref, *, betas, tb,
                    n_valid, m_valid, mask_rows, mask_cols, native_mxu):
    """One (batch-block, row-tile, col-tile) step of the RBF kernel-matrix sum.

    a_ref: (tb, tn, D) block of "row" points    (native dtype)
    b_ref: (tb, tm, D) block of "column" points (native dtype)
    out_ref: (8, 128) f32 tile (leading block dims squeezed); every element holds
        this (batch-block, row-tile)'s partial sum.  It is written only on the
        last col-tile step so the store is a single unmasked lane-dense vst and
        there is no per-inner-step HBM writeback.
    acc_ref: (8, 128) f32 VMEM scratch accumulator.
    """
    i = pl.program_id(1)
    j = pl.program_id(2)
    tn = a_ref.shape[1]
    tm = b_ref.shape[1]
    d = a_ref.shape[2]

    @pl.when(j == 0)
    def _():
        acc_ref[...] = jnp.zeros_like(acc_ref)

    # Validity masks for zero-padded rows / columns (static no-ops when the
    # point counts are already tile multiples).
    valid = None
    if mask_rows:
        rows = i * tn + lax.broadcasted_iota(jnp.int32, (tn, 1), 0)
        valid = rows < n_valid
    if mask_cols:
        cols = j * tm + lax.broadcasted_iota(jnp.int32, (1, tm), 1)
        cmask = cols < m_valid
        valid = cmask if valid is None else jnp.logical_and(valid, cmask)

    # Hoisted constant (JAX does not CSE broadcast_in_dim inside the unrolled loop).
    ones_row = jnp.ones((1, d), jnp.float32)

    tile_acc = None
    for lb in range(tb):                       # static unroll over the batch sub-block
        av = a_ref[lb]                         # (tn, D) native dtype
        bv = b_ref[lb]                         # (tm, D) native dtype
        a32 = av.astype(jnp.float32)
        b32 = bv.astype(jnp.float32)
        bsq = b32 * b32

        # Squared norms.  The row-point norm comes straight from a lane reduce
        # as a (tn, 1) column; the column-point norm is produced as a (1, tm)
        # row with a 1-row matmul (<= tn/8-th of the gram's MXU work).
        # NOTE(review): an XLU relayout of the (tm, 1) column into a (1, tm) row
        # would take this off the MXU entirely, but (tm,1)->(1,tm) reshapes /
        # transposes are not reliably lowered by Mosaic, so the known-good
        # ones-row matmul is kept (~3% extra MXU pressure at tn=256).
        an_col = jnp.sum(a32 * a32, axis=-1, keepdims=True)                 # (tn, 1)
        bn_row = jnp.einsum('od,md->om', ones_row, bsq,
                            preferred_element_type=jnp.float32)             # (1, tm)

        # Gram on the MXU.  bf16 inputs go in natively (f32 accumulate) at the
        # MXU's native rate; f32 inputs keep the f32 path (no precision change).
        lhs, rhs = (av, bv) if native_mxu else (a32, b32)
        gram = jnp.einsum('nd,md->nm', lhs, rhs,
                          preferred_element_type=jnp.float32)               # (tn, tm)

        # dist can be marginally negative from cancellation; left unclamped so
        # the behavior matches the PyTorch module / pure-JAX reference exactly.
        dist = an_col + bn_row - 2.0 * gram
        # TODO(synk): for very small D (< 128) a pure-VPU broadcast (a_i-b_j)^2
        # path may beat the underfilled MXU contraction; not implemented here.
        e = _rbf_mix(dist, betas)                                           # (tn, tm)
        tile_acc = e if tile_acc is None else tile_acc + e

    if valid is not None:
        tile_acc = jnp.where(valid, tile_acc, 0.0)

    # Broadcast the scalar partial sum across the lane-dense accumulator tile.
    acc_ref[...] = acc_ref[...] + jnp.sum(tile_acc)

    @pl.when(j == pl.num_programs(2) - 1)
    def _():
        out_ref[...] = acc_ref[...]


def _rbf_kernel_sum(a, b, *, betas, tile_n=None, tile_m=None):
    """sum over all (batch, i, j) of mean_k exp(-beta_k * ||a[batch,i]-b[batch,j]||^2)."""
    B, N, D = a.shape
    B2, M, D2 = b.shape
    assert B2 == B and D2 == D

    itemsize = a.dtype.itemsize
    row_cap = max(8, _round_up(int(tile_n), 8)) if tile_n else _ROW_TILE_CAP
    col_cap = max(8, _round_up(int(tile_m), 8)) if tile_m else _COL_TILE_CAP
    tn = _pick_point_tile(N, row_cap)
    tm = _pick_point_tile(M, col_cap)

    # Per-grid-step VMEM footprint: double-buffered input blocks + f32 temporaries.
    def step_bytes(tb_, tn_, tm_):
        return (2 * tb_ * (tn_ + tm_) * D * itemsize
                + (4 + tb_) * tn_ * tm_ * 4
                + 2 * (tn_ + tm_) * D * 4)

    # Shrink the distance tile if a huge feature dim would blow the budget.
    # TODO(synk): for extremely large D the feature axis itself should get a grid
    # axis (accumulate the gram over D-chunks) instead of shrinking tn/tm.
    while step_bytes(1, tn, tm) > _STEP_VMEM_BUDGET and (tn > 8 or tm > 8):
        if tm >= tn:
            tm = max(8, _round_up(tm // 2, 8))
        else:
            tn = max(8, _round_up(tn // 2, 8))

    # Fold several batch elements into one grid step to amortize the ~0.35 us
    # per-step overhead when the per-element tiles are tiny (tb always divides B).
    tb_cap = max(1, min(8, _STEP_VMEM_BUDGET // max(1, 2 * step_bytes(1, tn, tm))))
    tb = _largest_divisor_leq(B, tb_cap)

    n_pad = _round_up(N, tn)
    m_pad = _round_up(M, tm)
    if n_pad != N:
        a = jnp.pad(a, ((0, 0), (0, n_pad - N), (0, 0)))
    if m_pad != M:
        b = jnp.pad(b, ((0, 0), (0, m_pad - M), (0, 0)))

    native_mxu = (a.dtype == jnp.bfloat16 and b.dtype == jnp.bfloat16)
    num_bb = B // tb
    num_i = n_pad // tn
    num_j = m_pad // tm
    grid = (num_bb, num_i, num_j)

    vmem_limit = int(min(48 * 2 ** 20,
                         max(32 * 2 ** 20, 2 * step_bytes(tb, tn, tm))))

    kernel = functools.partial(
        _rbf_sum_kernel,
        betas=tuple(float(v) for v in betas),
        tb=tb, n_valid=N, m_valid=M,
        mask_rows=(n_pad != N), mask_cols=(m_pad != M),
        native_mxu=native_mxu)

    out = pl.pallas_call(
        kernel,
        out_shape=jax.ShapeDtypeStruct((num_bb, num_i, 8, 128), jnp.float32),
        grid=grid,
        in_specs=[
            # Row block: index_map is independent of the innermost j axis, so the
            # block is not re-DMA'd across the inner reduction sweep.
            pl.BlockSpec((tb, tn, D), lambda bb, i, j: (bb, i, 0)),
            pl.BlockSpec((tb, tm, D), lambda bb, i, j: (bb, j, 0)),
        ],
        out_specs=pl.BlockSpec((None, None, 8, 128),
                               lambda bb, i, j: (bb, i, 0, 0)),
        scratch_shapes=[pltpu.VMEM((8, 128), jnp.float32)],
        compiler_params=pltpu.CompilerParams(
            # batch-block / row-tile axes are independent (megacore split on
            # multi-TensorCore chips); the col-tile axis is the reduction.
            # TODO(synk): try pltpu.CORE_PARALLEL on the leading axis on v7x.
            dimension_semantics=("parallel", "parallel", "arbitrary"),
            vmem_limit_bytes=vmem_limit),
    )(a, b)

    # Every lane of each (8, 128) tile holds that (batch-block, row-tile)'s
    # partial sum; pick one lane per tile and reduce in plain JAX.
    return jnp.sum(out[:, :, 0, 0])


@functools.partial(jax.jit,
                   static_argnames=("kbws", "skip_y", "tile_n", "tile_m"))
def mmd_loss(x, y, kbws=(1.0,), skip_y=True, tile_n=None, tile_m=None):
    """Pallas-backed equivalent of MMDLoss.forward.

    x: (B, N, D), y: (B, M, D).  `kbws` are the kernel bandwidths (sigmas), fixed
    at module construction time in the PyTorch code, hence static here.
    """
    assert x.ndim == 3 and y.ndim == 3
    assert x.shape[0] == y.shape[0] and x.shape[2] == y.shape[2]
    B, N, _ = x.shape
    M = y.shape[1]
    betas = tuple(1.0 / (2.0 * float(s)) for s in kbws)

    rbf_sum = functools.partial(_rbf_kernel_sum, betas=betas,
                                tile_n=tile_n, tile_m=tile_m)
    cost = rbf_sum(x, x) / float(B * N * N)
    cost = cost - 2.0 * rbf_sum(x, y) / float(B * N * M)
    if not skip_y:
        cost = cost + rbf_sum(y, y) / float(B * M * M)
    return cost


class MMDLoss:
    """Thin stateful wrapper mirroring the PyTorch module interface."""
    name = "mmd"

    def __init__(self, kbws=None):
        self.kbws = tuple(float(k) for k in kbws) if kbws is not None else (1.0,)

    def __call__(self, x, y, sigmas=None, skip_y=True):
        del sigmas  # unused, exactly as in the PyTorch forward
        return mmd_loss(x, y, kbws=self.kbws, skip_y=skip_y)

    forward = __call__


def _mmd_reference(x, y, kbws, skip_y=True):
    """Pure-JAX mirror of the PyTorch module, for correctness checking."""
    x = x.astype(jnp.float32)
    y = y.astype(jnp.float32)
    beta = 1.0 / (2.0 * jnp.asarray(kbws, jnp.float32).reshape(-1, 1, 1, 1))

    def pdist(a, b):
        an = jnp.sum(a * a, axis=2)[:, :, None]
        bn = jnp.sum(b * b, axis=2)[:, None, :]
        return an + bn - 2.0 * jnp.einsum('bnd,bmd->bnm', a, b)

    def rbf(a, b):
        d = pdist(a, b)
        return jnp.mean(jnp.exp(-beta * d[None]), axis=0)

    cost = rbf(x, x).mean() - 2.0 * rbf(x, y).mean()
    if not skip_y:
        cost = cost + rbf(y, y).mean()
    return cost


if __name__ == "__main__":
    key = jax.random.PRNGKey(0)
    kx, ky = jax.random.split(key)

    # Small shapes implied by the module: batch=2, points(seq)=8, hidden=32.
    B, N, D = 2, 8, 32
    x = jax.random.normal(kx, (B, N, D), dtype=jnp.float32)
    y = jax.random.normal(ky, (B, N, D), dtype=jnp.float32)

    kbws = (0.5, 1.0, 2.0)
    loss = MMDLoss(kbws)

    # skip_y=True (module default)
    out = jax.block_until_ready(loss(x, y))
    ref = _mmd_reference(x, y, kbws, skip_y=True)
    assert jnp.allclose(out, ref, rtol=1e-5, atol=1e-5), (out, ref)

    # skip_y=False branch
    out_full = jax.block_until_ready(loss(x, y, skip_y=False))
    ref_full = _mmd_reference(x, y, kbws, skip_y=False)
    assert jnp.allclose(out_full, ref_full, rtol=1e-5, atol=1e-5), (out_full, ref_full)

    # default kbws = ones(1)
    out_def = jax.block_until_ready(MMDLoss()(x, y))
    ref_def = _mmd_reference(x, y, (1.0,), skip_y=True)
    assert jnp.allclose(out_def, ref_def, rtol=1e-5, atol=1e-5), (out_def, ref_def)

    # bf16 inputs exercise the native-dtype MXU path (f32 accumulation).
    xb = x.astype(jnp.bfloat16)
    yb = y.astype(jnp.bfloat16)
    out_bf = jax.block_until_ready(loss(xb, yb))
    ref_bf = _mmd_reference(xb, yb, kbws, skip_y=True)
    assert jnp.allclose(out_bf, ref_bf, rtol=1e-4, atol=1e-4), (out_bf, ref_bf)

    # Ragged point counts exercise the zero-pad + in-kernel mask path.
    k3, k4 = jax.random.split(ky)
    x3 = jax.random.normal(k3, (3, 20, 32), dtype=jnp.float32)
    y3 = jax.random.normal(k4, (3, 12, 32), dtype=jnp.float32)
    out3 = jax.block_until_ready(mmd_loss(x3, y3, kbws=kbws, skip_y=False))
    ref3 = _mmd_reference(x3, y3, kbws, skip_y=False)
    assert jnp.allclose(out3, ref3, rtol=1e-5, atol=1e-5), (out3, ref3)

    # Forcing tiny tiles exercises the multi-step (i, j) reduction grid with the
    # row block DMA-resident across the inner j sweep.
    k5, k6 = jax.random.split(k3)
    x4 = jax.random.normal(k5, (2, 24, 32), dtype=jnp.float32)
    y4 = jax.random.normal(k6, (2, 40, 32), dtype=jnp.float32)
    out4 = jax.block_until_ready(
        mmd_loss(x4, y4, kbws=kbws, skip_y=False, tile_n=8, tile_m=16))
    ref4 = _mmd_reference(x4, y4, kbws, skip_y=False)
    assert jnp.allclose(out4, ref4, rtol=1e-5, atol=1e-5), (out4, ref4)

    print("KERNEL_OK")
</pallas_src>

<mosaic_0001>
module attributes {stable_mosaic.version = 11 : i64} {
  func.func @_rbf_sum_kernel(%arg0: i32, %arg1: i32, %arg2: i32, %arg3: memref<2x8x32xf32, #tpu.memory_space<vmem>>, %arg4: memref<2x8x32xf32, #tpu.memory_space<vmem>>, %arg5: memref<1x1x8x128xf32, #tpu.memory_space<vmem>>, %arg6: memref<8x128xf32, #tpu.memory_space<vmem>>) attributes {dimension_semantics = [#tpu.dimension_semantics<parallel>, #tpu.dimension_semantics<parallel>, #tpu.dimension_semantics<arbitrary>], iteration_bounds = array<i64: 1, 1, 1>, scalar_prefetch = 0 : i64, scratch_operands = 1 : i64, tpu.core_type = #tpu.core_type<tc>, window_params = [{transform_indices = @transform_0, window_bounds = array<i64: 2, 8, 32>}, {transform_indices = @transform_1, window_bounds = array<i64: 2, 8, 32>}, {transform_indices = @transform_2, window_bounds = array<i64: 1, 1, 8, 128>}]} {
    %c0_i32 = arith.constant 0 : i32
    %0 = arith.cmpi eq, %arg2, %c0_i32 : i32
    %1 = arith.extui %0 : i1 to i32
    %c0_i32_0 = arith.constant 0 : i32
    %2 = arith.cmpi ne, %1, %c0_i32_0 : i32
    scf.if %2 {
      %cst_30 = arith.constant 0.000000e+00 : f32
      %66 = vector.broadcast %cst_30 : f32 to vector<8x128xf32>
      %c0_31 = arith.constant 0 : index
      %c0_32 = arith.constant 0 : index
      %67 = vector.load %arg6[%c0_31, %c0_32] : memref<8x128xf32, #tpu.memory_space<vmem>>, vector<8x128xf32>
      tpu.vector_store %arg6[%c0_31, %c0_32], %66 {strides = array<i32>} : memref<8x128xf32, #tpu.memory_space<vmem>>, vector<8x128xf32>,
    } else {
    }
    %cst = arith.constant 1.000000e+00 : f32
    %3 = vector.broadcast %cst : f32 to vector<1x32xf32>
    %c0 = arith.constant 0 : index
    %c0_1 = arith.constant 0 : index
    %c0_2 = arith.constant 0 : index
    %4 = vector.load %arg3[%c0, %c0_1, %c0_2] : memref<2x8x32xf32, #tpu.memory_space<vmem>>, vector<1x8x32xf32>
    %5 = vector.shape_cast %4 : vector<1x8x32xf32> to vector<8x32xf32>
    %c0_3 = arith.constant 0 : index
    %c0_4 = arith.constant 0 : index
    %c0_5 = arith.constant 0 : index
    %6 = vector.load %arg4[%c0_3, %c0_4, %c0_5] : memref<2x8x32xf32, #tpu.memory_space<vmem>>, vector<1x8x32xf32>
    %7 = vector.shape_cast %6 : vector<1x8x32xf32> to vector<8x32xf32>
    %8 = arith.mulf %7, %7 : vector<8x32xf32>
    %9 = arith.mulf %5, %5 : vector<8x32xf32>
    %cst_6 = arith.constant dense<0.000000e+00> : vector<8xf32>
    %10 = vector.multi_reduction <add>, %9, %cst_6 [1] : vector<8x32xf32> to vector<8xf32>
    %11 = vector.shape_cast %10 : vector<8xf32> to vector<8x1xf32>
    "tpu.trace_start"() <{level = 10 : i32, message = "od,md->om"}> : () -> ()
    %cst_7 = arith.constant dense<0.000000e+00> : vector<1x8xf32>
    %12 = tpu.matmul %3, %8, %cst_7 {dimension_numbers = #tpu.dot_dimension_numbers<[1], [1], [0], [0], [0, 0, 1, 0], [], []>} : vector<1x32xf32>, vector<8x32xf32>, vector<1x8xf32> -> vector<1x8xf32>
    "tpu.trace_stop"() : () -> ()
    "tpu.trace_start"() <{level = 10 : i32, message = "nd,md->nm"}> : () -> ()
    %cst_8 = arith.constant dense<0.000000e+00> : vector<8x8xf32>
    %13 = tpu.matmul %5, %7, %cst_8 {dimension_numbers = #tpu.dot_dimension_numbers<[1], [1], [0], [0], [0, 0, 1, 0], [], []>} : vector<8x32xf32>, vector<8x32xf32>, vector<8x8xf32> -> vector<8x8xf32>
    "tpu.trace_stop"() : () -> ()
    %14 = vector.broadcast %11 : vector<8x1xf32> to vector<8x8xf32>
    %15 = vector.broadcast %12 : vector<1x8xf32> to vector<8x8xf32>
    %16 = arith.addf %14, %15 : vector<8x8xf32>
    %cst_9 = arith.constant 2.000000e+00 : f32
    %17 = vector.broadcast %cst_9 : f32 to vector<8x8xf32>
    %18 = arith.mulf %17, %13 : vector<8x8xf32>
    %19 = arith.subf %16, %18 : vector<8x8xf32>
    %cst_10 = arith.constant -2.500000e-01 : f32
    %20 = vector.broadcast %cst_10 : f32 to vector<8x8xf32>
    %21 = arith.mulf %20, %19 : vector<8x8xf32>
    %22 = math.exp %21 : vector<8x8xf32>
    %23 = arith.mulf %22, %22 : vector<8x8xf32>
    %24 = arith.mulf %23, %23 : vector<8x8xf32>
    %25 = arith.addf %24, %23 : vector<8x8xf32>
    %26 = arith.addf %25, %22 : vector<8x8xf32>
    %cst_11 = arith.constant 0.333333343 : f32
    %27 = vector.broadcast %cst_11 : f32 to vector<8x8xf32>
    %28 = arith.mulf %26, %27 : vector<8x8xf32>
    %c1 = arith.constant 1 : index
    %c0_12 = arith.constant 0 : index
    %c0_13 = arith.constant 0 : index
    %29 = vector.load %arg3[%c1, %c0_12, %c0_13] : memref<2x8x32xf32, #tpu.memory_space<vmem>>, vector<1x8x32xf32>
    %30 = vector.shape_cast %29 : vector<1x8x32xf32> to vector<8x32xf32>
    %c1_14 = arith.constant 1 : index
    %c0_15 = arith.constant 0 : index
    %c0_16 = arith.constant 0 : index
    %31 = vector.load %arg4[%c1_14, %c0_15, %c0_16] : memref<2x8x32xf32, #tpu.memory_space<vmem>>, vector<1x8x32xf32>
    %32 = vector.shape_cast %31 : vector<1x8x32xf32> to vector<8x32xf32>
    %33 = arith.mulf %32, %32 : vector<8x32xf32>
    %34 = arith.mulf %30, %30 : vector<8x32xf32>
    %cst_17 = arith.constant dense<0.000000e+00> : vector<8xf32>
    %35 = vector.multi_reduction <add>, %34, %cst_17 [1] : vector<8x32xf32> to vector<8xf32>
    %36 = vector.shape_cast %35 : vector<8xf32> to vector<8x1xf32>
    "tpu.trace_start"() <{level = 10 : i32, message = "od,md->om"}> : () -> ()
    %cst_18 = arith.constant dense<0.000000e+00> : vector<1x8xf32>
    %37 = tpu.matmul %3, %33, %cst_18 {dimension_numbers = #tpu.dot_dimension_numbers<[1], [1], [0], [0], [0, 0, 1, 0], [], []>} : vector<1x32xf32>, vector<8x32xf32>, vector<1x8xf32> -> vector<1x8xf32>
    "tpu.trace_stop"() : () -> ()
    "tpu.trace_start"() <{level = 10 : i32, message = "nd,md->nm"}> : () -> ()
    %cst_19 = arith.constant dense<0.000000e+00> : vector<8x8xf32>
    %38 = tpu.matmul %30, %32, %cst_19 {dimension_numbers = #tpu.dot_dimension_numbers<[1], [1], [0], [0], [0, 0, 1, 0], [], []>} : vector<8x32xf32>, vector<8x32xf32>, vector<8x8xf32> -> vector<8x8xf32>
    "tpu.trace_stop"() : () -> ()
    %39 = vector.broadcast %36 : vector<8x1xf32> to vector<8x8xf32>
    %40 = vector.broadcast %37 : vector<1x8xf32> to vector<8x8xf32>
    %41 = arith.addf %39, %40 : vector<8x8xf32>
    %cst_20 = arith.constant 2.000000e+00 : f32
    %42 = vector.broadcast %cst_20 : f32 to vector<8x8xf32>
    %43 = arith.mulf %42, %38 : vector<8x8xf32>
    %44 = arith.subf %41, %43 : vector<8x8xf32>
    %cst_21 = arith.constant -2.500000e-01 : f32
    %45 = vector.broadcast %cst_21 : f32 to vector<8x8xf32>
    %46 = arith.mulf %45, %44 : vector<8x8xf32>
    %47 = math.exp %46 : vector<8x8xf32>
    %48 = arith.mulf %47, %47 : vector<8x8xf32>
    %49 = arith.mulf %48, %48 : vector<8x8xf32>
    %50 = arith.addf %49, %48 : vector<8x8xf32>
    %51 = arith.addf %50, %47 : vector<8x8xf32>
    %cst_22 = arith.constant 0.333333343 : f32
    %52 = vector.broadcast %cst_22 : f32 to vector<8x8xf32>
    %53 = arith.mulf %51, %52 : vector<8x8xf32>
    %54 = arith.addf %28, %53 : vector<8x8xf32>
    %c0_23 = arith.constant 0 : index
    %c0_24 = arith.constant 0 : index
    %55 = vector.load %arg6[%c0_23, %c0_24] : memref<8x128xf32, #tpu.memory_space<vmem>>, vector<8x128xf32>
    %56 = vector.shape_cast %54 : vector<8x8xf32> to vector<1x8x8xf32>
    %cst_25 = arith.constant dense<0.000000e+00> : vector<1xf32>
    %57 = vector.multi_reduction <add>, %56, %cst_25 [1, 2] : vector<1x8x8xf32> to vector<1xf32>
    %58 = vector.shape_cast %57 : vector<1xf32> to vector<1x1x1xf32>
    %59 = vector.extract %58[0, 0, 0] : f32 from vector<1x1x1xf32>
    %60 = vector.broadcast %59 : f32 to vector<8x128xf32>
    %61 = arith.addf %55, %60 : vector<8x128xf32>
    %c0_26 = arith.constant 0 : index
    %c0_27 = arith.constant 0 : index
    %62 = vector.load %arg6[%c0_26, %c0_27] : memref<8x128xf32, #tpu.memory_space<vmem>>, vector<8x128xf32>
    tpu.vector_store %arg6[%c0_26, %c0_27], %61 {strides = array<i32>} : memref<8x128xf32, #tpu.memory_space<vmem>>, vector<8x128xf32>,
    %c0_i32_28 = arith.constant 0 : i32
    %63 = arith.cmpi eq, %arg2, %c0_i32_28 : i32
    %64 = arith.extui %63 : i1 to i32
    %c0_i32_29 = arith.constant 0 : i32
    %65 = arith.cmpi ne, %64, %c0_i32_29 : i32
    scf.if %65 {
      %c0_30 = arith.constant 0 : index
      %c0_31 = arith.constant 0 : index
      %66 = vector.load %arg6[%c0_30, %c0_31] : memref<8x128xf32, #tpu.memory_space<vmem>>, vector<8x128xf32>
      %c0_32 = arith.constant 0 : index
      %c0_33 = arith.constant 0 : index
      %c0_34 = arith.constant 0 : index
      %c0_35 = arith.constant 0 : index
      %67 = vector.load %arg5[%c0_32, %c0_33, %c0_34, %c0_35] : memref<1x1x8x128xf32, #tpu.memory_space<vmem>>, vector<1x1x8x128xf32>
      %68 = vector.shape_cast %67 : vector<1x1x8x128xf32> to vector<8x128xf32>
      %69 = vector.shape_cast %66 : vector<8x128xf32> to vector<1x1x8x128xf32>
      tpu.vector_store %arg5[%c0_32, %c0_33, %c0_34, %c0_35], %69 {strides = array<i32>} : memref<1x1x8x128xf32, #tpu.memory_space<vmem>>, vector<1x1x8x128xf32>,
    } else {
    }
    return
  }
  func.func @transform_0(%arg0: i32, %arg1: i32, %arg2: i32) -> (i32, i32, i32) {
    %c0_i32 = arith.constant 0 : i32
    %c0_i32_0 = arith.constant 0 : i32
    return %arg0, %arg1, %c0_i32 : i32, i32, i32
  }
  func.func @transform_1(%arg0: i32, %arg1: i32, %arg2: i32) -> (i32, i32, i32) {
    %c0_i32 = arith.constant 0 : i32
    %c0_i32_0 = arith.constant 0 : i32
    return %arg0, %arg2, %c0_i32 : i32, i32, i32
  }
  func.func @transform_2(%arg0: i32, %arg1: i32, %arg2: i32) -> (i32, i32, i32, i32) {
    %c0_i32 = arith.constant 0 : i32
    %c0_i32_0 = arith.constant 0 : i32
    %c0_i32_1 = arith.constant 0 : i32
    return %arg0, %arg1, %c0_i32, %c0_i32_0 : i32, i32, i32, i32
  }
}

module attributes {stable_mosaic.version = 11 : i64} {
  func.func @_rbf_sum_kernel(%arg0: i32, %arg1: i32, %arg2: i32, %arg3: memref<2x8x32xf32, #tpu.memory_space<vmem>>, %arg4: memref<2x8x32xf32, #tpu.memory_space<vmem>>, %arg5: memref<1x1x8x128xf32, #tpu.memory_space<vmem>>, %arg6: memref<8x128xf32, #tpu.memory_space<vmem>>) attributes {dimension_semantics = [#tpu.dimension_semantics<parallel>, #tpu.dimension_semantics<parallel>, #tpu.dimension_semantics<arbitrary>], iteration_bounds = array<i64: 1, 1, 1>, scalar_prefetch = 0 : i64, scratch_operands = 1 : i64, tpu.core_type = #tpu.core_type<tc>, window_params = [{transform_indices = @transform_0, window_bounds = array<i64: 2, 8, 32>}, {transform_indices = @transform_1, window_bounds = array<i64: 2, 8, 32>}, {transform_indices = @transform_2, window_bounds = array<i64: 1, 1, 8, 128>}]} {
    %c0_i32 = arith.constant 0 : i32
    %0 = arith.cmpi eq, %arg2, %c0_i32 : i32
    %1 = arith.extui %0 : i1 to i32
    %c0_i32_0 = arith.constant 0 : i32
    %2 = arith.cmpi ne, %1, %c0_i32_0 : i32
    scf.if %2 {
      %cst_30 = arith.constant 0.000000e+00 : f32
      %66 = vector.broadcast %cst_30 : f32 to vector<8x128xf32>
      %c0_31 = arith.constant 0 : index
      %c0_32 = arith.constant 0 : index
      %67 = vector.load %arg6[%c0_31, %c0_32] : memref<8x128xf32, #tpu.memory_space<vmem>>, vector<8x128xf32>
      tpu.vector_store %arg6[%c0_31, %c0_32], %66 {strides = array<i32>} : memref<8x128xf32, #tpu.memory_space<vmem>>, vector<8x128xf32>,
    } else {
    }
    %cst = arith.constant 1.000000e+00 : f32
    %3 = vector.broadcast %cst : f32 to vector<1x32xf32>
    %c0 = arith.constant 0 : index
    %c0_1 = arith.constant 0 : index
    %c0_2 = arith.constant 0 : index
    %4 = vector.load %arg3[%c0, %c0_1, %c0_2] : memref<2x8x32xf32, #tpu.memory_space<vmem>>, vector<1x8x32xf32>
    %5 = vector.shape_cast %4 : vector<1x8x32xf32> to vector<8x32xf32>
    %c0_3 = arith.constant 0 : index
    %c0_4 = arith.constant 0 : index
    %c0_5 = arith.constant 0 : index
    %6 = vector.load %arg4[%c0_3, %c0_4, %c0_5] : memref<2x8x32xf32, #tpu.memory_space<vmem>>, vector<1x8x32xf32>
    %7 = vector.shape_cast %6 : vector<1x8x32xf32> to vector<8x32xf32>
    %8 = arith.mulf %7, %7 : vector<8x32xf32>
    %9 = arith.mulf %5, %5 : vector<8x32xf32>
    %cst_6 = arith.constant dense<0.000000e+00> : vector<8xf32>
    %10 = vector.multi_reduction <add>, %9, %cst_6 [1] : vector<8x32xf32> to vector<8xf32>
    %11 = vector.shape_cast %10 : vector<8xf32> to vector<8x1xf32>
    "tpu.trace_start"() <{level = 10 : i32, message = "od,md->om"}> : () -> ()
    %cst_7 = arith.constant dense<0.000000e+00> : vector<1x8xf32>
    %12 = tpu.matmul %3, %8, %cst_7 {dimension_numbers = #tpu.dot_dimension_numbers<[1], [1], [0], [0], [0, 0, 1, 0], [], []>} : vector<1x32xf32>, vector<8x32xf32>, vector<1x8xf32> -> vector<1x8xf32>
    "tpu.trace_stop"() : () -> ()
    "tpu.trace_start"() <{level = 10 : i32, message = "nd,md->nm"}> : () -> ()
    %cst_8 = arith.constant dense<0.000000e+00> : vector<8x8xf32>
    %13 = tpu.matmul %5, %7, %cst_8 {dimension_numbers = #tpu.dot_dimension_numbers<[1], [1], [0], [0], [0, 0, 1, 0], [], []>} : vector<8x32xf32>, vector<8x32xf32>, vector<8x8xf32> -> vector<8x8xf32>
    "tpu.trace_stop"() : () -> ()
    %14 = vector.broadcast %11 : vector<8x1xf32> to vector<8x8xf32>
    %15 = vector.broadcast %12 : vector<1x8xf32> to vector<8x8xf32>
    %16 = arith.addf %14, %15 : vector<8x8xf32>
    %cst_9 = arith.constant 2.000000e+00 : f32
    %17 = vector.broadcast %cst_9 : f32 to vector<8x8xf32>
    %18 = arith.mulf %17, %13 : vector<8x8xf32>
    %19 = arith.subf %16, %18 : vector<8x8xf32>
    %cst_10 = arith.constant -2.500000e-01 : f32
    %20 = vector.broadcast %cst_10 : f32 to vector<8x8xf32>
    %21 = arith.mulf %20, %19 : vector<8x8xf32>
    %22 = math.exp %21 : vector<8x8xf32>
    %23 = arith.mulf %22, %22 : vector<8x8xf32>
    %24 = arith.mulf %23, %23 : vector<8x8xf32>
    %25 = arith.addf %24, %23 : vector<8x8xf32>
    %26 = arith.addf %25, %22 : vector<8x8xf32>
    %cst_11 = arith.constant 0.333333343 : f32
    %27 = vector.broadcast %cst_11 : f32 to vector<8x8xf32>
    %28 = arith.mulf %26, %27 : vector<8x8xf32>
    %c1 = arith.constant 1 : index
    %c0_12 = arith.constant 0 : index
    %c0_13 = arith.constant 0 : index
    %29 = vector.load %arg3[%c1, %c0_12, %c0_13] : memref<2x8x32xf32, #tpu.memory_space<vmem>>, vector<1x8x32xf32>
    %30 = vector.shape_cast %29 : vector<1x8x32xf32> to vector<8x32xf32>
    %c1_14 = arith.constant 1 : index
    %c0_15 = arith.constant 0 : index
    %c0_16 = arith.constant 0 : index
    %31 = vector.load %arg4[%c1_14, %c0_15, %c0_16] : memref<2x8x32xf32, #tpu.memory_space<vmem>>, vector<1x8x32xf32>
    %32 = vector.shape_cast %31 : vector<1x8x32xf32> to vector<8x32xf32>
    %33 = arith.mulf %32, %32 : vector<8x32xf32>
    %34 = arith.mulf %30, %30 : vector<8x32xf32>
    %cst_17 = arith.constant dense<0.000000e+00> : vector<8xf32>
    %35 = vector.multi_reduction <add>, %34, %cst_17 [1] : vector<8x32xf32> to vector<8xf32>
    %36 = vector.shape_cast %35 : vector<8xf32> to vector<8x1xf32>
    "tpu.trace_start"() <{level = 10 : i32, message = "od,md->om"}> : () -> ()
    %cst_18 = arith.constant dense<0.000000e+00> : vector<1x8xf32>
    %37 = tpu.matmul %3, %33, %cst_18 {dimension_numbers = #tpu.dot_dimension_numbers<[1], [1], [0], [0], [0, 0, 1, 0], [], []>} : vector<1x32xf32>, vector<8x32xf32>, vector<1x8xf32> -> vector<1x8xf32>
    "tpu.trace_stop"() : () -> ()
    "tpu.trace_start"() <{level = 10 : i32, message = "nd,md->nm"}> : () -> ()
    %cst_19 = arith.constant dense<0.000000e+00> : vector<8x8xf32>
    %38 = tpu.matmul %30, %32, %cst_19 {dimension_numbers = #tpu.dot_dimension_numbers<[1], [1], [0], [0], [0, 0, 1, 0], [], []>} : vector<8x32xf32>, vector<8x32xf32>, vector<8x8xf32> -> vector<8x8xf32>
    "tpu.trace_stop"() : () -> ()
    %39 = vector.broadcast %36 : vector<8x1xf32> to vector<8x8xf32>
    %40 = vector.broadcast %37 : vector<1x8xf32> to vector<8x8xf32>
    %41 = arith.addf %39, %40 : vector<8x8xf32>
    %cst_20 = arith.constant 2.000000e+00 : f32
    %42 = vector.broadcast %cst_20 : f32 to vector<8x8xf32>
    %43 = arith.mulf %42, %38 : vector<8x8xf32>
    %44 = arith.subf %41, %43 : vector<8x8xf32>
    %cst_21 = arith.constant -2.500000e-01 : f32
    %45 = vector.broadcast %cst_21 : f32 to vector<8x8xf32>
    %46 = arith.mulf %45, %44 : vector<8x8xf32>
    %47 = math.exp %46 : vector<8x8xf32>
    %48 = arith.mulf %47, %47 : vector<8x8xf32>
    %49 = arith.mulf %48, %48 : vector<8x8xf32>
    %50 = arith.addf %49, %48 : vector<8x8xf32>
    %51 = arith.addf %50, %47 : vector<8x8xf32>
    %cst_22 = arith.constant 0.333333343 : f32
    %52 = vector.broadcast %cst_22 : f32 to vector<8x8xf32>
    %53 = arith.mulf %51, %52 : vector<8x8xf32>
    %54 = arith.addf %28, %53 : vector<8x8xf32>
    %c0_23 = arith.constant 0 : index
    %c0_24 = arith.constant 0 : index
    %55 = vector.load %arg6[%c0_23, %c0_24] : memref<8x128xf32, #tpu.memory_space<vmem>>, vector<8x128xf32>
    %56 = vector.shape_cast %54 : vector<8x8xf32> to vector<1x8x8xf32>
    %cst_25 = arith.constant dense<0.000000e+00> : vector<1xf32>
    %57 = vector.multi_reduction <add>, %56, %cst_25 [1, 2] : vector<1x8x8xf32> to vector<1xf32>
    %58 = vector.shape_cast %57 : vector<1xf32> to vector<1x1x1xf32>
    %59 = vector.extract %58[0, 0, 0] : f32 from vector<1x1x1xf32>
    %60 = vector.broadcast %59 : f32 to vector<8x128xf32>
    %61 = arith.addf %55, %60 : vector<8x128xf32>
    %c0_26 = arith.constant 0 : index
    %c0_27 = arith.constant 0 : index
    %62 = vector.load %arg6[%c0_26, %c0_27] : memref<8x128xf32, #tpu.memory_space<vmem>>, vector<8x128xf32>
    tpu.vector_store %arg6[%c0_26, %c0_27], %61 {strides = array<i32>} : memref<8x128xf32, #tpu.memory_space<vmem>>, vector<8x128xf32>,
    %c0_i32_28 = arith.constant 0 : i32
    %63 = arith.cmpi eq, %arg2, %c0_i32_28 : i32
    %64 = arith.extui %63 : i1 to i32
    %c0_i32_29 = arith.constant 0 : i32
    %65 = arith.cmpi ne, %64, %c0_i32_29 : i32
    scf.if %65 {
      %c0_30 = arith.constant 0 : index
      %c0_31 = arith.constant 0 : index
      %66 = vector.load %arg6[%c0_30, %c0_31] : memref<8x128xf32, #tpu.memory_space<vmem>>, vector<8x128xf32>
      %c0_32 = arith.constant 0 : index
      %c0_33 = arith.constant 0 : index
      %c0_34 = arith.constant 0 : index
      %c0_35 = arith.constant 0 : index
      %67 = vector.load %arg5[%c0_32, %c0_33, %c0_34, %c0_35] : memref<1x1x8x128xf32, #tpu.memory_space<vmem>>, vector<1x1x8x128xf32>
      %68 = vector.shape_cast %67 : vector<1x1x8x128xf32> to vector<8x128xf32>
      %69 = vector.shape_cast %66 : vector<8x128xf32> to vector<1x1x8x128xf32>
      tpu.vector_store %arg5[%c0_32, %c0_33, %c0_34, %c0_35], %69 {strides = array<i32>} : memref<1x1x8x128xf32, #tpu.memory_space<vmem>>, vector<1x1x8x128xf32>,
    } else {
    }
    return
  }
  func.func @transform_0(%arg0: i32, %arg1: i32, %arg2: i32) -> (i32, i32, i32) {
    %c0_i32 = arith.constant 0 : i32
    %c0_i32_0 = arith.constant 0 : i32
    return %arg0, %arg1, %c0_i32 : i32, i32, i32
  }
  func.func @transform_1(%arg0: i32, %arg1: i32, %arg2: i32) -> (i32, i32, i32) {
    %c0_i32 = arith.constant 0 : i32
    %c0_i32_0 = arith.constant 0 : i32
    return %arg0, %arg2, %c0_i32 : i32, i32, i32
  }
  func.func @transform_2(%arg0: i32, %arg1: i32, %arg2: i32) -> (i32, i32, i32, i32) {
    %c0_i32 = arith.constant 0 : i32
    %c0_i32_0 = arith.constant 0 : i32
    %c0_i32_1 = arith.constant 0 : i32
    return %arg0, %arg1, %c0_i32, %c0_i32_0 : i32, i32, i32, i32
  }
}

</mosaic_0001>

<bundles_post_ra>
// kernel: mmd_loss.2
= control target key start
LH: loop header
LB: loop body
LE: loop exit
PB: predicated region body
PF: predicated region fallthrough
CT: control target
= control target key end

     0   :  { %vm20_vm0 = vcmask 261120   ;;  %v436_v0 = vmov 0.0   ;;  %vm437_vm1 = vmmov 0   ;;  %v438_v10 = vmov 1.0   ;;  %s483_s1 = inlined_call_operand.vmem [shape: f32[2,8,32], index: 1, kind: input, shape index: {}, may-alias: {0,1}]   ;;  %s484_s0 = inlined_call_operand.vmem [shape: f32[2,8,32], index: 0, kind: input, shape index: {}, may-alias: {0,1}]   ;;  %s485_s2 = inlined_call_operand.vmem [shape: f32[1,1,8,128], index: 2, kind: output, shape index: {}]  }
   0x1   :  { %407 = vmatprep.subr.mxu0 %v436_v0  ;;  %v17_v1 = vld [vmem:[%s483_s1] sm:$0xff]  ;;  %v394_v2 = vld [vmem:[%s483_s1 + $0x8] sm:$0xff]  ;;  %412 = vmatprep.subr.mxu1 %v436_v0  ;;  %v176_v12 = vlaneseq  ;;  %vm366_vm2 = vcmask 64512  }
   0x2   :  { %v16_v3 = vld [vmem:[%s484_s0] sm:$0xff]  ;;  %v18_v4 = vmul.f32 %v17_v1, %v17_v1  ;;  %409 = vmatprep.mubr.msk.f32.mxu0 %vm437_vm1, %v436_v0  ;;  %413 = vmatpush3.xpose.msk.msra.mxu1 %vm20_vm0, %v17_v1  ;;  %v393_v6 = vld [vmem:[%s484_s0 + $0x8] sm:$0xff]  ;;  %v195_v7 = vmul.f32 %v394_v2, %v394_v2 }
   0x3   :  { %v19_v5 = vmul.f32 %v16_v3, %v16_v3  ;;  %414 = vmatprep.mubr.msk.f32.mxu1 %vm437_vm1, %v436_v0  ;;  %422 = vmatprep.subr.mxu1 %v436_v0  ;;  %v196_v9 = vmul.f32 %v393_v6, %v393_v6  ;;  %v177_v13 = vshrl.u32 %v176_v12, 7 }
   0x4   :  { %408 = vmatpush3.xpose.msk.msra.mxu0 %vm20_vm0, %v18_v4 }
   0x5   :  { %v21_v8 = vsel %vm20_vm0, %v19_v5, 0.0  ;;  %417 = vmatprep.subr.mxu0 %v436_v0  ;;  %415 = vmatmul.mubr.msk.f32.vlgmr.msra.gmra.mrb[0].mxu1 %vm20_vm0, %v16_v3  ;;  %v197_v11 = vsel %vm20_vm0, %v196_v9, 0.0  ;;  %v178_v14 = vsub.s32 0, %v177_v13 }
   0x6   :  { %423 = vmatpush3.xpose.msk.msra.mxu1 %vm20_vm0, %v394_v2  ;;  %424 = vmatprep.mubr.msk.f32.mxu1 %vm437_vm1, %v436_v0 }
   0x7   :  { %410 = vmatmul.mubr.msk.f32.vlgmr.msra.gmra.mrb[0].mxu0 %vm20_vm0, %v438_v10  ;;  %22 = vadd.xlane.f32.xlu0 %v21_v8 }
   0x8   :  { %418 = vmatpush3.xpose.msk.msra.mxu0 %vm20_vm0, %v195_v7  ;;  %419 = vmatprep.mubr.msk.f32.mxu0 %vm437_vm1, %v436_v0 }
   0x9   :  { %425 = vmatmul.mubr.msk.f32.vlgmr.msra.gmra.mrb[2].mxu1 %vm20_vm0, %v393_v6 }
   0xb   :  { %420 = vmatmul.mubr.msk.f32.vlgmr.msra.gmra.mrb[2].mxu0 %vm20_vm0, %v438_v10  ;;  %198 = vadd.xlane.f32.xlu0 %v197_v11 }
  0x94   :  { %v23_v16 = vpop.xlane.xlu0 %22 }
  0x98   :  { %v199_v26 = vpop.xlane.xlu0 %198 }
  0xd8   :  { %v172_v15 = vpop.f32.mrb[0].mxu1 }
  0xd9   :  { %v416_v17 = vpop.f32.mrb[1].mxu1  ;;  %v181_v21 = vmul.f32 2.0, %v172_v15 }
  0xda   :  { %v96_v18 = vpop.f32.mrb[0].mxu0 }
  0xdb   :  { %v179_v19 = vrot.slane %v96_v18, %v178_v14  ;;  %v411_v20 = vpop.f32.mrb[1].mxu0 }
  0xdc   :  { %v345_v22 = vpop.f32.mrb[2].mxu1 }
  0xdd   :  { %v180_v23 = vadd.f32 %v179_v19, %v23_v16  ;;  %v426_v24 = vpop.f32.mrb[3].mxu1  ;;  %v354_v30 = vmul.f32 2.0, %v345_v22 }
  0xde   :  { %v269_v25 = vpop.f32.mrb[2].mxu0 }
  0xdf   :  { %v182_v27 = vsub.f32 %v180_v23, %v181_v21  ;;  %v352_v28 = vrot.slane %v269_v25, %v178_v14  ;;  %v421_v29 = vpop.f32.mrb[3].mxu0 }
  0xe1   :  { %v183_v31 = vmul.f32 -0.25, %v182_v27  ;;  %v353_v32 = vadd.f32 %v352_v28, %v199_v26 }
  0xe3   :  { %v184_v33 = vmul.f32 1.442695, %v183_v31  ;;  %v355_v34 = vsub.f32 %v353_v32, %v354_v30 }
  0xe5   :  { %432 = vpow2.f32 %v184_v33  ;;  %v356_v35 = vmul.f32 -0.25, %v355_v34 }
  0xe7   :  { %v357_v36 = vmul.f32 1.442695, %v356_v35 }
  0xe9   :  { %434 = vpow2.f32 %v357_v36 }
  0xef   :  { %v433_v37 = vpop.eup %432 }
  0xf0   :  { %v186_v38 = vmul.f32 %v433_v37, %v433_v37 }
  0xf2   :  { %v187_v39 = vmul.f32 %v186_v38, %v186_v38 }
  0xf3   :  { %v435_v40 = vpop.eup %434 }
  0xf4   :  { %v188_v41 = vadd.f32 %v187_v39, %v186_v38  ;;  %v359_v42 = vmul.f32 %v435_v40, %v435_v40 }
  0xf6   :  { %v360_v43 = vmul.f32 %v359_v42, %v359_v42  ;;  %v189_v44 = vadd.f32 %v433_v37, %v188_v41 }
  0xf8   :  { %v361_v45 = vadd.f32 %v360_v43, %v359_v42  ;;  %v190_v47 = vmul.f32 0.33333334, %v189_v44 }
  0xfa   :  { %v362_v46 = vadd.f32 %v435_v40, %v361_v45 }
  0xfc   :  { %v363_v48 = vmul.f32 0.33333334, %v362_v46 }
  0xfe   :  { %v364_v49 = vadd.f32 %v363_v48, %v190_v47 }
 0x100   :  { %v367_v50 = vsel %vm366_vm2, %v364_v49, 0.0 }
 0x101   :  { %368 = vadd.xlane.f32.xlu1 %v367_v50 }
 0x18e   :  { %v369_v51 = vpop.xlane.xlu1 %368 }
 0x18f   :  { %v370_v52 = vrot.slane %v369_v51, 4 }
 0x191   :  { %v371_v53 = vadd.f32 %v370_v52, %v369_v51 }
 0x193   :  { %v372_v54 = vrot.slane %v371_v53, 2 }
 0x195   :  { %v373_v55 = vadd.f32 %v372_v54, %v371_v53 }
 0x197   :  { %v374_v56 = vrot.slane %v373_v55, 1 }
 0x199   :  { %v375_v57 = vadd.f32 %v374_v56, %v373_v55 }
 0x19b   :  { %427 = vpush %v375_v57 }
 0x1cc   :  { %s428_s0 = spop %427 }
 0x1cd   :  { %v377_v58 = vstv %s428_s0 }
 0x1ce   :  { %384 = vst [vmem:[%s485_s2] sm:$0xff] %v377_v58 }

// kernel: mmd_loss.3
= control target key start
LH: loop header
LB: loop body
LE: loop exit
PB: predicated region body
PF: predicated region fallthrough
CT: control target
= control target key end

     0   :  { %7 = vsyncpa [#allocation4], 0  ;;  %s579_s0 = inlined_call_operand.hbm [shape: f32[2,8,32], index: 0, kind: input, shape index: {}]   ;;  %s580_s1 = inlined_call_operand.hbm [shape: f32[2,8,32], index: 1, kind: input, shape index: {}]   ;;  %s581_s2 = inlined_call_operand.vmem [shape: f32[1,1,8,128], index: 2, kind: output, shape index: {}]  }
   0x1   :  { %8 = vsyncpa [#allocation6], 0  ;;  %s516_s9 = smov [#allocation3]   ;;  %s468_s13 = scalar_lea.hbm %s579_s0, 256 }
   0x2   :  { %s14_s10 = sshll.u32 %s516_s9, 4  ;;  %p469_p0 = scmp.ne.s32.totalorder %s579_s0, %s468_s13  ;;  %s15_s10 = int_to_ptr.vmem [resolvable:$true] %s14_s10 }
   0x3   :  { %p472_p1 = scmp.lt.u32.totalorder %s468_s13, %s579_s0 }
   0x5   :  { %p474_p2 = pnand %p472_p1, %p469_p0 }
   0x7   :  { %477 = shalt.err (!%p474_p2)
}
   0x8   :  { %s478_s18 = scalar_lea.vmem %s15_s10, 256  ;;  %p483_p4 = scmp.lt.s32.totalorder %s15_s10, %s15_s10 }
   0x9   :  { %p479_p3 = scmp.ne.s32.totalorder %s15_s10, %s478_s18  ;;  %p484_p5 = scmp.lt.s32.totalorder %s478_s18, %s478_s18 }
   0xb   :  { %p485_p6 = por %p484_p5, %p483_p4 }
   0xd   :  { %p486_p7 = pnand %p485_p6, %p479_p3 }
   0xf   :  { %489 = shalt.err (!%p486_p7)
}
  0x10   :  { %s517_s19 = smov 128   ;;  %s518_s20 = smov 8  }
  0x11   :  { %20 = dma.hbm_to_vmem [thread:$0]  %s579_s0, 256, %s15_s10, [#allocation4], %s517_s19, %s517_s19, %s518_s20  }
  0x12   :  { %s519_s23 = smov [#allocation5]   ;;  %s490_s27 = scalar_lea.hbm %s580_s1, 256 }
  0x13   :  { %s26_s24 = sshll.u32 %s519_s23, 4  ;;  %p491_p8 = scmp.ne.s32.totalorder %s580_s1, %s490_s27  ;;  %s27_s24 = int_to_ptr.vmem [resolvable:$true] %s26_s24 }
  0x14   :  { %p494_p9 = scmp.lt.u32.totalorder %s490_s27, %s580_s1 }
  0x16   :  { %p496_p10 = pnand %p494_p9, %p491_p8 }
  0x18   :  { %499 = shalt.err (!%p496_p10)
}
  0x19   :  { %s500_s4 = scalar_lea.vmem %s27_s24, 256  ;;  %p505_p12 = scmp.lt.s32.totalorder %s27_s24, %s27_s24 }
  0x1a   :  { %p501_p11 = scmp.ne.s32.totalorder %s27_s24, %s500_s4  ;;  %p506_p13 = scmp.lt.s32.totalorder %s500_s4, %s500_s4 }
  0x1c   :  { %p507_p0 = por %p506_p13, %p505_p12 }
  0x1e   :  { %p508_p1 = pnand %p507_p0, %p501_p11 }
  0x20   :  { %511 = shalt.err (!%p508_p1)
}
  0x21   :  { %32 = dma.hbm_to_vmem [thread:$0]  %s580_s1, 256, %s27_s24, [#allocation6], %s517_s19, %s517_s19, %s518_s20  }
  0x22   :  { %512 = dma.done.wait [#allocation4], 256  }
  0x23   :  { %513 = vsyncadd [#allocation4], 4294967040 }
  0x24   :  { %514 = dma.done.wait [#allocation6], 256  }
  0x25   :  { %515 = vsyncadd [#allocation6], 4294967040  ;;  %v520_v0 = vmov 0.0   ;;  %vm521_vm0 = vmmov 0   ;;  %vm48_vm1 = vcmask 261120   ;;  %v45_v1 = vld [vmem:[#allocation5] sm:$0xff]  ;;  %v204_v12 = vlaneseq }
  0x26   :  { %435 = vmatprep.subr.mxu0 %v520_v0  ;;  %440 = vmatprep.subr.mxu1 %v520_v0  ;;  %v222_v2 = vld [vmem:[#allocation5 + $0x8] sm:$0xff]  ;;  %v44_v3 = vld [vmem:[#allocation3] sm:$0xff]  ;;  %v46_v4 = vmul.f32 %v45_v1, %v45_v1  ;;  %v220_v6 = vld [vmem:[#allocation3 + $0x8] sm:$0xff]  ;;  %v522_v10 = vmov 1.0   ;;  %vm394_vm2 = vcmask 64512  }
  0x27   :  { %437 = vmatprep.mubr.msk.f32.mxu0 %vm521_vm0, %v520_v0  ;;  %442 = vmatprep.mubr.msk.f32.mxu1 %vm521_vm0, %v520_v0  ;;  %v47_v5 = vmul.f32 %v44_v3, %v44_v3  ;;  %v223_v7 = vmul.f32 %v222_v2, %v222_v2  ;;  %v224_v9 = vmul.f32 %v220_v6, %v220_v6  ;;  %v205_v13 = vshrl.u32 %v204_v12, 7 }
  0x28   :  { %441 = vmatpush3.xpose.msk.msra.mxu1 %vm48_vm1, %v45_v1  ;;  %436 = vmatpush3.xpose.msk.msra.mxu0 %vm48_vm1, %v46_v4 }
  0x29   :  { %450 = vmatprep.subr.mxu1 %v520_v0  ;;  %v49_v8 = vsel %vm48_vm1, %v47_v5, 0.0  ;;  %445 = vmatprep.subr.mxu0 %v520_v0  ;;  %v225_v11 = vsel %vm48_vm1, %v224_v9, 0.0  ;;  %v206_v14 = vsub.s32 0, %v205_v13 }
  0x2a   :  { %50 = vadd.xlane.f32.xlu0 %v49_v8 }
  0x2b   :  { %443 = vmatmul.mubr.msk.f32.vlgmr.msra.gmra.mrb[0].mxu1 %vm48_vm1, %v44_v3  ;;  %438 = vmatmul.mubr.msk.f32.vlgmr.msra.gmra.mrb[0].mxu0 %vm48_vm1, %v522_v10 }
  0x2c   :  { %451 = vmatpush3.xpose.msk.msra.mxu1 %vm48_vm1, %v222_v2  ;;  %452 = vmatprep.mubr.msk.f32.mxu1 %vm521_vm0, %v520_v0 }
  0x2d   :  { %446 = vmatpush3.xpose.msk.msra.mxu0 %vm48_vm1, %v223_v7  ;;  %447 = vmatprep.mubr.msk.f32.mxu0 %vm521_vm0, %v520_v0 }
  0x2e   :  { %226 = vadd.xlane.f32.xlu0 %v225_v11 }
  0x2f   :  { %453 = vmatmul.mubr.msk.f32.vlgmr.msra.gmra.mrb[2].mxu1 %vm48_vm1, %v220_v6 }
  0x30   :  { %448 = vmatmul.mubr.msk.f32.vlgmr.msra.gmra.mrb[2].mxu0 %vm48_vm1, %v522_v10 }
  0xb7   :  { %v51_v16 = vpop.xlane.xlu0 %50 }
  0xbb   :  { %v227_v26 = vpop.xlane.xlu0 %226 }
  0xfe   :  { %v200_v15 = vpop.f32.mrb[0].mxu1  ;;  %v124_v18 = vpop.f32.mrb[0].mxu0 }
  0xff   :  { %v444_v17 = vpop.f32.mrb[1].mxu1  ;;  %v207_v19 = vrot.slane %v124_v18, %v206_v14  ;;  %v439_v20 = vpop.f32.mrb[1].mxu0  ;;  %v209_v21 = vmul.f32 2.0, %v200_v15 }
 0x101   :  { %v208_v23 = vadd.f32 %v207_v19, %v51_v16 }
 0x102   :  { %v373_v22 = vpop.f32.mrb[2].mxu1 }
 0x103   :  { %v454_v24 = vpop.f32.mrb[3].mxu1  ;;  %v297_v25 = vpop.f32.mrb[2].mxu0  ;;  %v210_v27 = vsub.f32 %v208_v23, %v209_v21  ;;  %v382_v30 = vmul.f32 2.0, %v373_v22 }
 0x104   :  { %v380_v28 = vrot.slane %v297_v25, %v206_v14  ;;  %v449_v29 = vpop.f32.mrb[3].mxu0 }
 0x105   :  { %v211_v31 = vmul.f32 -0.25, %v210_v27 }
 0x106   :  { %v381_v32 = vadd.f32 %v380_v28, %v227_v26 }
 0x107   :  { %v212_v33 = vmul.f32 1.442695, %v211_v31 }
 0x108   :  { %v383_v34 = vsub.f32 %v381_v32, %v382_v30 }
 0x109   :  { %464 = vpow2.f32 %v212_v33 }
 0x10a   :  { %v384_v35 = vmul.f32 -0.25, %v383_v34 }
 0x10c   :  { %v385_v36 = vmul.f32 1.442695, %v384_v35 }
 0x10e   :  { %466 = vpow2.f32 %v385_v36 }
 0x113   :  { %v465_v37 = vpop.eup %464 }
 0x114   :  { %v214_v38 = vmul.f32 %v465_v37, %v465_v37 }
 0x116   :  { %v215_v39 = vmul.f32 %v214_v38, %v214_v38 }
 0x118   :  { %v467_v40 = vpop.eup %466  ;;  %v216_v41 = vadd.f32 %v215_v39, %v214_v38 }
 0x119   :  { %v387_v42 = vmul.f32 %v467_v40, %v467_v40 }
 0x11a   :  { %v217_v44 = vadd.f32 %v465_v37, %v216_v41 }
 0x11b   :  { %v388_v43 = vmul.f32 %v387_v42, %v387_v42 }
 0x11c   :  { %v218_v47 = vmul.f32 0.33333334, %v217_v44 }
 0x11d   :  { %v389_v45 = vadd.f32 %v388_v43, %v387_v42 }
 0x11f   :  { %v390_v46 = vadd.f32 %v467_v40, %v389_v45 }
 0x121   :  { %v391_v48 = vmul.f32 0.33333334, %v390_v46 }
 0x123   :  { %v392_v49 = vadd.f32 %v391_v48, %v218_v47 }
 0x125   :  { %v395_v50 = vsel %vm394_vm2, %v392_v49, 0.0 }
 0x126   :  { %396 = vadd.xlane.f32.xlu1 %v395_v50 }
 0x1b3   :  { %v397_v51 = vpop.xlane.xlu1 %396 }
 0x1b4   :  { %v398_v52 = vrot.slane %v397_v51, 4 }
 0x1b6   :  { %v399_v53 = vadd.f32 %v398_v52, %v397_v51 }
 0x1b8   :  { %v400_v54 = vrot.slane %v399_v53, 2 }
 0x1ba   :  { %v401_v55 = vadd.f32 %v400_v54, %v399_v53 }
 0x1bc   :  { %v402_v56 = vrot.slane %v401_v55, 1 }
 0x1be   :  { %v403_v57 = vadd.f32 %v402_v56, %v401_v55 }
 0x1c0   :  { %455 = vpush %v403_v57 }
 0x1f1   :  { %s456_s1 = spop %455 }
 0x1f2   :  { %v405_v58 = vstv %s456_s1 }
 0x1f3   :  { %412 = vst [vmem:[%s581_s2] sm:$0xff] %v405_v58 }
 0x1f4   :  { %417 = vsyncpa [#allocation4], 1 }
 0x1f5   :  { %418 = vsyncpa [#allocation6], 1 }

</bundles_post_ra>
